<compile_context>
chip_gen: v7x
topology: tpu7x:2x2x1
jax: 0.10.0
libtpu: 0.0.40
codegen_flags: <defaults>
</compile_context>

<pallas_src>
import jax
import jax.numpy as jnp
from jax import lax
from jax.experimental import pallas as pl
from jax.experimental.pallas import tpu as pltpu


_VMEM_LIMIT = 32 * 1024 * 1024  # explicit: raises v5e's 16 MiB default, stays
                                # within v6e/v7x defaults and v7x's 64 MiB phys.


def _round_up(x, m):
    return (x + m - 1) // m * m


def _cdiv(a, b):
    return (a + b - 1) // b


def _pick_tiles(n_rows, n_lanes):
    """Divisibility-independent tile selection (cdiv grid + edge masking)."""
    # Lane tile: lane-dense multiple of 128, large to amortize the ~0.35us
    # per-grid-step overhead, capped so an fp32 tile stays modest.
    ts = min(4096, _round_up(n_lanes, 128))
    # Row tile: multiple of 8; budget ~4 MiB per fp32 tile, capped at 1024 rows
    # (pass-2 working set 2x(in+out) then stays <= ~16 MiB double-buffered).
    tr_cap = (4 * 1024 * 1024) // (ts * 4)
    tr_cap = max(256, min(1024, (tr_cap // 8) * 8))
    tr = min(tr_cap, _round_up(n_rows, 8))
    # Keep >= 2 row blocks when possible: on v7x only the 'parallel' row axis
    # of pass 1 can be sharded across the 2 TensorCores.  Costs at most one
    # extra grid step on v5e/v6e (1 TC), so always apply it.
    if n_rows > 8 and _cdiv(n_rows, tr) < 2:
        tr = max(8, _round_up(_cdiv(n_rows, 2), 8))
    return tr, ts


def _make_pool_reduce_kernel(s_true, ts):
    """Streaming per-row sum & max over S tiles, fp32 accumulation."""
    n_lane_chunks = ts // 128
    has_tail = (s_true % ts) != 0  # static: masking only needed if True

    def _fold(xs, xm):
        # Fold a (TR, ts) tile lane-tile-by-lane-tile into (TR, 128) partials
        # using only element-wise VPU ops; static lane-aligned slices are free
        # views.  The cross-lane XLU reduce is deferred to finalize.
        s = xs[:, 0:128]
        m = xm[:, 0:128]
        for j in range(1, n_lane_chunks):
            sl = slice(j * 128, (j + 1) * 128)
            s = s + xs[:, sl]
            m = jnp.maximum(m, xm[:, sl])
        return s, m

    def kernel(x_ref, sum_ref, max_ref, sum_acc, max_acc):
        s_idx = pl.program_id(1)
        last_s = pl.num_programs(1) - 1

        @pl.when(s_idx == 0)
        def _init():
            sum_acc[...] = jnp.zeros_like(sum_acc)
            max_acc[...] = jnp.full_like(max_acc, -jnp.inf)

        x = x_ref[...].astype(jnp.float32)  # (TR, ts) fp32

        def _accum(xs, xm):
            s, m = _fold(xs, xm)
            sum_acc[...] = sum_acc[...] + s
            max_acc[...] = jnp.maximum(max_acc[...], m)

        if not has_tail:
            # Every S tile is fully in-bounds: no mask work at all.
            _accum(x, x)
        else:
            @pl.when(s_idx != last_s)
            def _full_tile():
                _accum(x, x)

            @pl.when(s_idx == last_s)
            def _tail_tile():
                # Edge block: columns >= s_true hold unspecified data (input
                # is NOT padded), so both sum and max must be masked here.
                col = s_idx * ts + lax.broadcasted_iota(jnp.int32, x.shape, 1)
                valid = col < s_true
                _accum(jnp.where(valid, x, 0.0),
                       jnp.where(valid, x, -jnp.inf))

        @pl.when(s_idx == last_s)
        def _finalize():
            # One cross-lane reduce + narrow (TR, 1) store per row block.
            # Rows beyond R in a ragged row block hold garbage here, but their
            # writeback is masked by Pallas and they are never consumed.
            sum_ref[...] = jnp.sum(sum_acc[...], axis=-1, keepdims=True)
            max_ref[...] = jnp.max(max_acc[...], axis=-1, keepdims=True)

    return kernel


def _apply_scale_kernel(x_ref, scale_ref, out_ref):
    # Multiply in the input dtype; scale is (TR, 1) -> cheap lane broadcast.
    out_ref[...] = x_ref[...] * scale_ref[...]


def channel_gate(x, w1, b1, w2, b2):
    """x: (B, C, D, H, W).  w1: (Ch, C), b1: (Ch,), w2: (C, Ch), b2: (C,)."""
    B, C, D, H, W = x.shape
    S = D * H * W
    R = B * C
    orig_dtype = x.dtype

    x2 = x.reshape(R, S)  # contiguous reshape: no copy
    TR, TS = _pick_tiles(R, S)
    grid = (_cdiv(R, TR), _cdiv(S, TS))

    # ---- Pass 1: global avg/max pooling (tiled streaming reduction) ----
    sum_p, max_p = pl.pallas_call(
        _make_pool_reduce_kernel(S, TS),
        out_shape=(jax.ShapeDtypeStruct((R, 1), jnp.float32),
                   jax.ShapeDtypeStruct((R, 1), jnp.float32)),
        grid=grid,
        in_specs=[pl.BlockSpec((TR, TS), lambda r, s: (r, s))],
        out_specs=(pl.BlockSpec((TR, 1), lambda r, s: (r, 0)),
                   pl.BlockSpec((TR, 1), lambda r, s: (r, 0))),
        scratch_shapes=[pltpu.VMEM((TR, 128), jnp.float32),
                        pltpu.VMEM((TR, 128), jnp.float32)],
        compiler_params=pltpu.CompilerParams(
            dimension_semantics=("parallel", "arbitrary"),
            vmem_limit_bytes=_VMEM_LIMIT),
    )(x2)

    # ---- Tiny shared MLP + sigmoid on (B, C): hoisted out of the hot kernels ----
    avg_pool = (sum_p * (1.0 / float(S))).reshape(B, C)
    max_pool = max_p.reshape(B, C)

    w1f = w1.astype(jnp.float32)
    b1f = b1.astype(jnp.float32)
    w2f = w2.astype(jnp.float32)
    b2f = b2.astype(jnp.float32)

    def mlp(p):
        h = p @ w1f.T + b1f
        h = jnp.where(h > 0, h, 0.01 * h)  # nn.LeakyReLU() default slope = 0.01
        return h @ w2f.T + b2f

    att = mlp(avg_pool) + mlp(max_pool)
    scale = jax.nn.sigmoid(att).reshape(R, 1).astype(orig_dtype)

    # ---- Pass 2: streamed, lane-dense scale-and-multiply ----
    # NOTE: input_output_aliases={0: 0} would let the output reuse x's HBM
    # buffer (halves activation footprint) but only pays off when the caller
    # donates x; left off so x remains valid after the call.
    out = pl.pallas_call(
        _apply_scale_kernel,
        out_shape=jax.ShapeDtypeStruct((R, S), orig_dtype),
        grid=grid,
        in_specs=[pl.BlockSpec((TR, TS), lambda r, s: (r, s)),
                  pl.BlockSpec((TR, 1), lambda r, s: (r, 0))],
        out_specs=pl.BlockSpec((TR, TS), lambda r, s: (r, s)),
        compiler_params=pltpu.CompilerParams(
            dimension_semantics=("parallel", "parallel"),
            vmem_limit_bytes=_VMEM_LIMIT),
    )(x2, scale)

    return out.reshape(B, C, D, H, W)


def channel_gate_ref(x, w1, b1, w2, b2):
    """Pure-JAX reference (mirrors the PyTorch forward)."""
    B, C = x.shape[0], x.shape[1]
    avg_pool = jnp.mean(x, axis=(2, 3, 4))
    max_pool = jnp.max(x, axis=(2, 3, 4))

    def mlp(p):
        h = p @ w1.T + b1
        h = jnp.where(h > 0, h, 0.01 * h)
        return h @ w2.T + b2

    att = mlp(avg_pool) + mlp(max_pool)
    scale = jax.nn.sigmoid(att).reshape(B, C, 1, 1, 1)
    return x * scale


if __name__ == "__main__":
    key = jax.random.PRNGKey(0)

    def run_case(k, B, C, D, H, W, reduction):
        Ch = max(C // reduction, 1)
        kx, k1, k2, k3, k4 = jax.random.split(k, 5)
        x = jax.random.normal(kx, (B, C, D, H, W), dtype=jnp.float32)
        bound1 = 1.0 / (C ** 0.5)
        bound2 = 1.0 / (Ch ** 0.5)
        w1 = jax.random.uniform(k1, (Ch, C), jnp.float32, -bound1, bound1)
        b1 = jax.random.uniform(k2, (Ch,), jnp.float32, -bound1, bound1)
        w2 = jax.random.uniform(k3, (C, Ch), jnp.float32, -bound2, bound2)
        b2 = jax.random.uniform(k4, (C,), jnp.float32, -bound2, bound2)

        out = jax.block_until_ready(channel_gate(x, w1, b1, w2, b2))
        ref = channel_gate_ref(x, w1, b1, w2, b2)
        assert out.shape == x.shape
        err = float(jnp.max(jnp.abs(out - ref)))
        assert jnp.allclose(out, ref, atol=1e-5, rtol=1e-5), err

    k0, k1, k2 = jax.random.split(key, 3)
    # Aligned: gate_channels=32, reduction=16, S = 8*8*8 = 512 (no tail mask);
    # R = 64 is split into 2 row blocks (keeps both v7x TensorCores busy).
    run_case(k0, 2, 32, 8, 8, 8, 16)
    # Unaligned: S = 4*5*6 = 120 (< 128 -> masked tail tile), R = 40 (ragged
    # row blocks: exercises edge-block masking with NO padding copies).
    run_case(k1, 2, 20, 4, 5, 6, 4)
    # Multi-tile reduction: S = 17*16*16 = 4352 > TS = 4096 -> 2 S tiles, mask
    # only on the second (tail-mask gating + lane-wide scratch accumulators).
    run_case(k2, 1, 8, 17, 16, 16, 4)

    print("KERNEL_OK")
</pallas_src>

<mosaic_0001>
module attributes {stable_mosaic.version = 11 : i64} {
  func.func @kernel(%arg0: i32, %arg1: i32, %arg2: memref<32x512xf32, #tpu.memory_space<vmem>>, %arg3: memref<32x1xf32, #tpu.memory_space<vmem>>, %arg4: memref<32x1xf32, #tpu.memory_space<vmem>>, %arg5: memref<32x128xf32, #tpu.memory_space<vmem>>, %arg6: memref<32x128xf32, #tpu.memory_space<vmem>>) attributes {dimension_semantics = [#tpu.dimension_semantics<parallel>, #tpu.dimension_semantics<arbitrary>], iteration_bounds = array<i64: 2, 1>, scalar_prefetch = 0 : i64, scratch_operands = 2 : i64, tpu.core_type = #tpu.core_type<tc>, window_params = [{transform_indices = @transform_0, window_bounds = array<i64: 32, 512>}, {transform_indices = @transform_1, window_bounds = array<i64: 32, 1>}, {transform_indices = @transform_2, window_bounds = array<i64: 32, 1>}]} {
    %c0_i32 = arith.constant 0 : i32
    %0 = arith.cmpi eq, %arg1, %c0_i32 : i32
    %1 = arith.extui %0 : i1 to i32
    %c0_i32_0 = arith.constant 0 : i32
    %2 = arith.cmpi ne, %1, %c0_i32_0 : i32
    scf.if %2 {
      %cst = arith.constant 0.000000e+00 : f32
      %27 = vector.broadcast %cst : f32 to vector<32x128xf32>
      %c0_12 = arith.constant 0 : index
      %c0_13 = arith.constant 0 : index
      %28 = vector.load %arg5[%c0_12, %c0_13] : memref<32x128xf32, #tpu.memory_space<vmem>>, vector<32x128xf32>
      tpu.vector_store %arg5[%c0_12, %c0_13], %27 {strides = array<i32>} : memref<32x128xf32, #tpu.memory_space<vmem>>, vector<32x128xf32>,
      %cst_14 = arith.constant 0xFF800000 : f32
      %29 = vector.broadcast %cst_14 : f32 to vector<32x128xf32>
      %c0_15 = arith.constant 0 : index
      %c0_16 = arith.constant 0 : index
      %30 = vector.load %arg6[%c0_15, %c0_16] : memref<32x128xf32, #tpu.memory_space<vmem>>, vector<32x128xf32>
      tpu.vector_store %arg6[%c0_15, %c0_16], %29 {strides = array<i32>} : memref<32x128xf32, #tpu.memory_space<vmem>>, vector<32x128xf32>,
    } else {
    }
    %c0 = arith.constant 0 : index
    %c0_1 = arith.constant 0 : index
    %3 = vector.load %arg2[%c0, %c0_1] : memref<32x512xf32, #tpu.memory_space<vmem>>, vector<32x512xf32>
    %4 = vector.extract_strided_slice %3 {offsets = [0, 0], sizes = [32, 128], strides = [1, 1]} : vector<32x512xf32> to vector<32x128xf32>
    %5 = vector.extract_strided_slice %3 {offsets = [0, 0], sizes = [32, 128], strides = [1, 1]} : vector<32x512xf32> to vector<32x128xf32>
    %6 = vector.extract_strided_slice %3 {offsets = [0, 128], sizes = [32, 128], strides = [1, 1]} : vector<32x512xf32> to vector<32x128xf32>
    %7 = arith.addf %4, %6 : vector<32x128xf32>
    %8 = vector.extract_strided_slice %3 {offsets = [0, 128], sizes = [32, 128], strides = [1, 1]} : vector<32x512xf32> to vector<32x128xf32>
    %9 = arith.maximumf %5, %8 : vector<32x128xf32>
    %10 = vector.extract_strided_slice %3 {offsets = [0, 256], sizes = [32, 128], strides = [1, 1]} : vector<32x512xf32> to vector<32x128xf32>
    %11 = arith.addf %7, %10 : vector<32x128xf32>
    %12 = vector.extract_strided_slice %3 {offsets = [0, 256], sizes = [32, 128], strides = [1, 1]} : vector<32x512xf32> to vector<32x128xf32>
    %13 = arith.maximumf %9, %12 : vector<32x128xf32>
    %14 = vector.extract_strided_slice %3 {offsets = [0, 384], sizes = [32, 128], strides = [1, 1]} : vector<32x512xf32> to vector<32x128xf32>
    %15 = arith.addf %11, %14 : vector<32x128xf32>
    %16 = vector.extract_strided_slice %3 {offsets = [0, 384], sizes = [32, 128], strides = [1, 1]} : vector<32x512xf32> to vector<32x128xf32>
    %17 = arith.maximumf %13, %16 : vector<32x128xf32>
    %c0_2 = arith.constant 0 : index
    %c0_3 = arith.constant 0 : index
    %18 = vector.load %arg5[%c0_2, %c0_3] : memref<32x128xf32, #tpu.memory_space<vmem>>, vector<32x128xf32>
    %19 = arith.addf %18, %15 : vector<32x128xf32>
    %c0_4 = arith.constant 0 : index
    %c0_5 = arith.constant 0 : index
    %20 = vector.load %arg5[%c0_4, %c0_5] : memref<32x128xf32, #tpu.memory_space<vmem>>, vector<32x128xf32>
    tpu.vector_store %arg5[%c0_4, %c0_5], %19 {strides = array<i32>} : memref<32x128xf32, #tpu.memory_space<vmem>>, vector<32x128xf32>,
    %c0_6 = arith.constant 0 : index
    %c0_7 = arith.constant 0 : index
    %21 = vector.load %arg6[%c0_6, %c0_7] : memref<32x128xf32, #tpu.memory_space<vmem>>, vector<32x128xf32>
    %22 = arith.maximumf %21, %17 : vector<32x128xf32>
    %c0_8 = arith.constant 0 : index
    %c0_9 = arith.constant 0 : index
    %23 = vector.load %arg6[%c0_8, %c0_9] : memref<32x128xf32, #tpu.memory_space<vmem>>, vector<32x128xf32>
    tpu.vector_store %arg6[%c0_8, %c0_9], %22 {strides = array<i32>} : memref<32x128xf32, #tpu.memory_space<vmem>>, vector<32x128xf32>,
    %c0_i32_10 = arith.constant 0 : i32
    %24 = arith.cmpi eq, %arg1, %c0_i32_10 : i32
    %25 = arith.extui %24 : i1 to i32
    %c0_i32_11 = arith.constant 0 : i32
    %26 = arith.cmpi ne, %25, %c0_i32_11 : i32
    scf.if %26 {
      %c0_12 = arith.constant 0 : index
      %c0_13 = arith.constant 0 : index
      %27 = vector.load %arg5[%c0_12, %c0_13] : memref<32x128xf32, #tpu.memory_space<vmem>>, vector<32x128xf32>
      %cst = arith.constant dense<0.000000e+00> : vector<32xf32>
      %28 = vector.multi_reduction <add>, %27, %cst [1] : vector<32x128xf32> to vector<32xf32>
      %29 = vector.shape_cast %28 : vector<32xf32> to vector<32x1xf32>
      %c0_14 = arith.constant 0 : index
      %c0_15 = arith.constant 0 : index
      %30 = vector.load %arg3[%c0_14, %c0_15] : memref<32x1xf32, #tpu.memory_space<vmem>>, vector<32x1xf32>
      tpu.vector_store %arg3[%c0_14, %c0_15], %29 {strides = array<i32>} : memref<32x1xf32, #tpu.memory_space<vmem>>, vector<32x1xf32>,
      %c0_16 = arith.constant 0 : index
      %c0_17 = arith.constant 0 : index
      %31 = vector.load %arg6[%c0_16, %c0_17] : memref<32x128xf32, #tpu.memory_space<vmem>>, vector<32x128xf32>
      %cst_18 = arith.constant dense<0xFF800000> : vector<32xf32>
      %32 = vector.multi_reduction <maximumf>, %31, %cst_18 [1] : vector<32x128xf32> to vector<32xf32>
      %33 = vector.shape_cast %32 : vector<32xf32> to vector<32x1xf32>
      %c0_19 = arith.constant 0 : index
      %c0_20 = arith.constant 0 : index
      %34 = vector.load %arg4[%c0_19, %c0_20] : memref<32x1xf32, #tpu.memory_space<vmem>>, vector<32x1xf32>
      tpu.vector_store %arg4[%c0_19, %c0_20], %33 {strides = array<i32>} : memref<32x1xf32, #tpu.memory_space<vmem>>, vector<32x1xf32>,
    } else {
    }
    return
  }
  func.func @transform_0(%arg0: i32, %arg1: i32) -> (i32, i32) {
    %c0_i32 = arith.constant 0 : i32
    return %arg0, %arg1 : i32, i32
  }
  func.func @transform_1(%arg0: i32, %arg1: i32) -> (i32, i32) {
    %c0_i32 = arith.constant 0 : i32
    %c0_i32_0 = arith.constant 0 : i32
    return %arg0, %c0_i32 : i32, i32
  }
  func.func @transform_2(%arg0: i32, %arg1: i32) -> (i32, i32) {
    %c0_i32 = arith.constant 0 : i32
    %c0_i32_0 = arith.constant 0 : i32
    return %arg0, %c0_i32 : i32, i32
  }
}

</mosaic_0001>

<bundles_post_ra>
// kernel: tpu_custom_call.1
= control target key start
LH: loop header
LB: loop body
LE: loop exit
PB: predicated region body
PF: predicated region fallthrough
CT: control target
= control target key end

     0   :  { %8 = vsyncpa [#allocation5], 0  ;;  %s750_s0 = inlined_call_operand.hbm [shape: f32[64,512], index: 0, kind: input, shape index: {}]   ;;  %s751_s1 = inlined_call_operand.vmem [shape: f32[64,1], index: 1, kind: output, shape index: {0}]   ;;  %s752_s2 = inlined_call_operand.vmem [shape: f32[64,1], index: 2, kind: output, shape index: {1}]  }
   0x1   :  { %10 = vsyncpa [#allocation5 + $0x1], 0  ;;  %s598_s9 = smov 0   ;;  %s600_s10 = smov 0  }
   0x2   :  { %s602_s11 = smov 0   ;;  %s604_s12 = smov 0  }
   0x3   :  { %s606_s13 = smov 0   ;;  %s608_s14 = smov 0  }
   0x4 LB: > { %s423_s15 = sadd.s32 4294967295, %s578_s14   ;;  %s28_s16 = sadd.s32 1, %s574_s13  ;;  %s578_s14 = sphi %s608_s14, %s16_s14   ;;  %s574_s13 = sphi %s606_s13, %s760_s13   ;;  %s570_s12 = sphi %s604_s12, %s759_s12   ;;  %s566_s11 = sphi %s602_s11, %s758_s11   ;;  %s562_s10 = sphi %s600_s10, %s757_s10   ;;  %s558_s9 = sphi %s598_s9, %s756_s9  }
   0x5   : > { %p30_p0 = scmp.ge.s32.totalorder %s28_s16, 2  ;;  %s37_s17 = sadd.s32 1, %s566_s11 }
   0x6   : > { %p44_p1 = scmp.ne.s32.totalorder %s566_s11, %s562_s10  ;;  %p45_p2 = scmp.eq.s32.totalorder %s578_s14, 0 }
   0x7   : > { %s762_s16 = smov (%p30_p0, %s28_s16), 0  ;;  %p50_p4 = scmp.ne.s32.totalorder %s562_s10, %s558_s9 }
   0x8   : > { %p634_p3 = por %p45_p2, %p44_p1  ;;  %s32_s19 = ssub.s32 %s574_s13, %s762_s16 }
   0x9   : > { %p51_p5 = scmp.eq.s32.totalorder %s423_s15, 0  ;;  %p35_p6 = scmp.eq.s32.totalorder %s32_s19, 0 }
   0xa   : > { %p447_p8 = scmp.lt.s32.totalorder %s578_s14, 2  ;;  %s126_s22 = sand.u32 1, %s566_s11  }
   0xb   : > { %p641_p7 = por %p51_p5, %p50_p4  ;;  %s440_s23 = sshll.u32 %s574_s13, 11 }
   0xc   : > { %s647_s21 = scalar_select %p35_p6, %s566_s11, %s37_s17  }
   0xd   : > { %s427_s24 = sshll.u32 %s126_s22, 7  ;;  %s654_s27 = scalar_lea.hbm %s750_s0, %s440_s23 }
   0xe   : > { %s130_s28 = scalar_lea.vmem [#allocation4], %s427_s24  ;;  %p658_p9 = pnand %p447_p8, %p634_p3 }
   0xf   : > { %s140_s29 = sshll.u32 %s130_s28, 4  ;;  %s664_s3 = scalar_lea.sflag [#allocation5], %s126_s22  ;;  %s662_s29 = int_to_ptr.vmem [resolvable:$true] %s140_s29 }
  0x10   : > { %s498_s4 = scalar_lea.hbm %s654_s27, 2048  ;;  %p500_p11 = pneg %p658_p9 }
  0x11   : > { %p499_p10 = scmp.ne.s32.totalorder %s654_s27, %s498_s4  ;;  %s503_s7 = scalar_lea.hbm %s750_s0, 4096 }
  0x12   : > { %p504_p0 = scmp.lt.u32.totalorder %s654_s27, %s750_s0  ;;  %p505_p1 = scmp.lt.u32.totalorder %s503_s7, %s498_s4 }
  0x13   : > { %p501_p12 = pnand %p500_p11, %p499_p10  ;;  %p507_p3 = scmp.lt.u32.totalorder %s498_s4, %s654_s27 }
  0x14   : > { %p506_p2 = por %p505_p1, %p504_p0 }
  0x15   : > { %p502_p13 = pneg %p501_p12 }
  0x16   : > { %p508_p4 = por %p507_p3, %p506_p2 }
  0x18   : > { %p509_p5 = pnand %p508_p4, %p502_p13 }
  0x1a   : > { %512 = shalt.err (!%p509_p5)
}
  0x1b   : > { %s513_s15 = scalar_lea.vmem %s662_s29, 2048  ;;  %s580_s17 = smov [#allocation4]  }
  0x1c   : > { %p514_p6 = scmp.ne.s32.totalorder %s662_s29, %s513_s15  ;;  %s518_s18 = sshll.u32 %s580_s17, 4  ;;  %s519_s18 = int_to_ptr.vmem [resolvable:$false] %s518_s18 }
  0x1d   : > { %s520_s19 = scalar_lea.vmem %s519_s18, 4096  ;;  %p521_p12 = scmp.lt.s32.totalorder %s662_s29, %s519_s18 }
  0x1e   : > { %p516_p8 = pnand %p514_p6, %p500_p11  ;;  %p522_p0 = scmp.lt.s32.totalorder %s520_s19, %s513_s15 }
  0x20   : > { %p517_p10 = pneg %p516_p8  ;;  %p523_p1 = por %p522_p0, %p521_p12 }
  0x22   : > { %p524_p2 = pnand %p523_p1, %p517_p10 }
  0x24   : > { %527 = shalt.err (!%p524_p2)
}
  0x25   : > { %s581_s22 = smov 512   ;;  %s582_s23 = smov 32  }
  0x26   : > { %446 = dma.hbm_to_vmem [thread:$0]  (!%p658_p9), %s654_s27, 2048, %s662_s29, %s664_s3, %s581_s22, %s581_s22, %s582_s23  }
  0x27   : > { %p431_p11 = scmp.ge.s32.totalorder %s578_s14, 1  ;;  %p148_p13 = scmp.lt.s32.totalorder %s578_s14, 3 }
  0x29   : > { %p149_p3 = pnand %p431_p11, %p148_p13 }
  0x2a   : > { %s154_s24 = sand.u32 (!%p149_p3), 1, %s562_s10  }
  0x2b   : > { %152 = sbr.rel (%p149_p3) target bundleno = 214 (0xd6), region = 24  ;;  %s432_s25 = sshll.u32 (!%p149_p3), %s154_s24, 7 }
  0x2c   : > { %s155_s26 = scalar_lea.sflag (!%p149_p3), [#allocation5], %s154_s24  ;;  %s695_s28 = scalar_lea.vmem (!%p149_p3), [#allocation4], %s432_s25 }
  0x32   : > { %553 = dma.done.wait (%p641_p7), %s155_s26, 2048  }
  0x33   : > { %555 = vsyncadd (%p641_p7), %s155_s26, 4294965248  ;;  %v214_v0 = vld [vmem:[%s695_s28 + $0x20] sm:$0xff]  ;;  %v215_v1 = vld [vmem:[%s695_s28 + $0x28] sm:$0xff]  ;;  %s433_s20 = sshll.u32 %s570_s12, 2  ;;  %vm289_vm0 = vcmask 7168  }
  0x34   : > { %v216_v2 = vld [vmem:[%s695_s28 + $0x30] sm:$0xff]  ;;  %v227_v3 = vadd.f32 %v215_v1, %v214_v0  ;;  %v210_v4 = vld [vmem:[%s695_s28] sm:$0xff]  ;;  %v211_v5 = vld [vmem:[%s695_s28 + $0x8] sm:$0xff]  ;;  %v231_v6 = vmax.f32 %v214_v0, %v215_v1  ;;  %p187_p7 = scmp.lt.s32.totalorder %s433_s20, 7 }
  0x35   : > { %v217_v7 = vld [vmem:[%s695_s28 + $0x38] sm:$0xff]  ;;  %v212_v8 = vld [vmem:[%s695_s28 + $0x10] sm:$0xff]  ;;  %v226_v9 = vadd.f32 %v211_v5, %v210_v4  ;;  %v230_v10 = vmax.f32 %v210_v4, %v211_v5  ;;  %v218_v11 = vld [vmem:[%s695_s28 + $0x40] sm:$0xff] }
  0x36   : > { %v235_v12 = vadd.f32 %v227_v3, %v216_v2  ;;  %v213_v13 = vld [vmem:[%s695_s28 + $0x18] sm:$0xff]  ;;  %v239_v14 = vmax.f32 %v231_v6, %v216_v2  ;;  %v219_v15 = vld [vmem:[%s695_s28 + $0x48] sm:$0xff]  ;;  %v220_v18 = vld [vmem:[%s695_s28 + $0x50] sm:$0xff]  ;;  %s764_s20 = smov (!%p187_p7, %s433_s20), 7 }
  0x37   : > { %v234_v16 = vadd.f32 %v226_v9, %v212_v8  ;;  %v238_v17 = vmax.f32 %v230_v10, %v212_v8  ;;  %v232_v19 = vmax.f32 %v218_v11, %v219_v15  ;;  %v228_v20 = vadd.f32 %v219_v15, %v218_v11  ;;  %v222_v21 = vld [vmem:[%s695_s28 + $0x60] sm:$0xff]  ;;  %v223_v22 = vld [vmem:[%s695_s28 + $0x68] sm:$0xff]  ;;  %v221_v29 = vld [vmem:[%s695_s28 + $0x58] sm:$0xff]  ;;  %s434_s27 = sshll.u32 %s764_s20, 3 }
  0x38   : > { %v243_v23 = vadd.f32 %v235_v12, %v217_v7  ;;  %v247_v25 = vmax.f32 %v239_v14, %v217_v7  ;;  %v233_v27 = vmax.f32 %v222_v21, %v223_v22  ;;  %v224_v31 = vld [vmem:[%s695_s28 + $0x70] sm:$0xff]  ;;  %v229_v32 = vadd.f32 %v223_v22, %v222_v21  ;;  %v225_v36 = vld [vmem:[%s695_s28 + $0x78] sm:$0xff]  ;;  %s190_s3 = scalar_lea.vmem %s751_s1, %s434_s27  ;;  %s196_s6 = scalar_lea.vmem %s752_s2, %s434_s27 }
  0x39   : > { %v242_v24 = vadd.f32 %v234_v16, %v213_v13  ;;  %v240_v26 = vmax.f32 %v232_v19, %v220_v18  ;;  %v246_v28 = vmax.f32 %v238_v17, %v213_v13  ;;  %v236_v30 = vadd.f32 %v228_v20, %v220_v18 }
  0x3a   : > { %283 = vadd.xlane.f32.xlu1 %v243_v23  ;;  %v241_v34 = vmax.f32 %v233_v27, %v224_v31  ;;  %v237_v37 = vadd.f32 %v229_v32, %v224_v31 }
  0x3b   : > { %281 = vadd.xlane.f32.xlu0 %v242_v24  ;;  %v248_v33 = vmax.f32 %v240_v26, %v221_v29  ;;  %v244_v35 = vadd.f32 %v236_v30, %v221_v29 }
  0x3c   : > { %v249_v38 = vmax.f32 %v241_v34, %v225_v36  ;;  %v245_v39 = vadd.f32 %v237_v37, %v225_v36 }
  0x3e   : > { %300 = vmax.xlane.f32.xlu1 %v247_v25 }
  0x3f   : > { %298 = vmax.xlane.f32.xlu0 %v246_v28 }
  0x42   : > { %302 = vmax.xlane.f32.xlu1 %v248_v33 }
  0x43   : > { %285 = vadd.xlane.f32.xlu0 %v244_v35 }
  0x46   : > { %304 = vmax.xlane.f32.xlu1 %v249_v38 }
  0x47   : > { %287 = vadd.xlane.f32.xlu0 %v245_v39 }
  0xc7   : > { %v284_v40 = vpop.xlane.xlu1 %283 }
  0xc8   : > { %v282_v41 = vpop.xlane.xlu0 %281  ;;  %291 = vst.msk [vmem:[%s190_s3 + $0x8] sm:$0xff] %vm289_vm0, %v284_v40 }
  0xc9   : > { %290 = vst.msk [vmem:[%s190_s3] sm:$0xff] %vm289_vm0, %v282_v41 }
  0xcb   : > { %v301_v42 = vpop.xlane.xlu1 %300 }
  0xcc   : > { %v299_v43 = vpop.xlane.xlu0 %298  ;;  %307 = vst.msk [vmem:[%s196_s6 + $0x8] sm:$0xff] %vm289_vm0, %v301_v42 }
  0xcd   : > { %306 = vst.msk [vmem:[%s196_s6] sm:$0xff] %vm289_vm0, %v299_v43 }
  0xcf   : > { %v303_v44 = vpop.xlane.xlu1 %302 }
  0xd0   : > { %308 = vst.msk [vmem:[%s196_s6 + $0x10] sm:$0xff] %vm289_vm0, %v303_v44  ;;  %v286_v45 = vpop.xlane.xlu0 %285 }
  0xd1   : > { %292 = vst.msk [vmem:[%s190_s3 + $0x10] sm:$0xff] %vm289_vm0, %v286_v45 }
  0xd3   : > { %v305_v46 = vpop.xlane.xlu1 %304 }
  0xd4   : > { %309 = vst.msk [vmem:[%s196_s6 + $0x18] sm:$0xff] %vm289_vm0, %v305_v46  ;;  %v288_v47 = vpop.xlane.xlu0 %287 }
  0xd5   : > { %293 = vst.msk [vmem:[%s190_s3 + $0x18] sm:$0xff] %vm289_vm0, %v288_v47 }
  0xd6 PF: > { %s16_s14 = sadd.s32 1, %s578_s14   ;;  %s756_s9 = smov %s562_s10 }
  0xd7   : > { %p13_p9 = scmp.ge.s32.totalorder %s16_s14, 4   ;;  %s757_s10 = smov %s566_s11 }
  0xd8   : > { %s758_s11 = smov %s647_s21  ;;  %s759_s12 = smov %s574_s13 }
  0xd9   : > { %s760_s13 = smov %s762_s16  ;;  %15 = sbr.rel (!%p13_p9) target bundleno = 4 (0x4), region = 84 }
  0xe0   :  { %349 = vsyncpa [#allocation5], 1 }
  0xe1   :  { %351 = vsyncpa [#allocation5 + $0x1], 1 }

</bundles_post_ra>
